<compile_context>
chip_gen: v7x
topology: tpu7x:2x2x1
jax: 0.10.0
libtpu: 0.0.40
codegen_flags: <defaults>
</compile_context>

<pallas_src>
import functools

import jax
import jax.numpy as jnp
from jax.experimental import pallas as pl
from jax.experimental.pallas import tpu as pltpu


def _round_up(x, m):
    return -(-x // m) * m


def masked_linear_kernel(x_ref, w_ref, b_ref, o_ref):
    # x: (tile_b, K) f32 -> cast to bf16 in-kernel (read x from HBM once).
    # w: (K, Np) bf16, sparsity mask already folded in.
    # b: (1, Np) f32.  o: (tile_b, Np) o_ref.dtype (bf16 by default).
    x = x_ref[...].astype(jnp.bfloat16)
    acc = jnp.dot(x, w_ref[...], preferred_element_type=jnp.float32)
    o_ref[...] = (acc + b_ref[...]).astype(o_ref.dtype)


def prepare_params(weight, mask, bias, *, lane=128):
    """One-time parameter preparation (call once, keep the results around).

    Folds the static sparsity mask into the weight, transposes to (K, N),
    pads only N to the 128-lane boundary (K=784 stays unpadded) and casts the
    GEMM operand to bf16.
    weight/mask: (num_classes, input_dim) like PyTorch; bias: (num_classes,).
    """
    N, K = weight.shape
    Np = _round_up(N, lane)
    w_masked_kn = (weight.astype(jnp.float32) * mask.astype(jnp.float32)).T  # (K, N)
    wp = jnp.zeros((K, Np), jnp.bfloat16).at[:, :N].set(w_masked_kn.astype(jnp.bfloat16))
    bp = jnp.zeros((1, Np), jnp.float32).at[:, :N].set(
        bias.reshape(1, N).astype(jnp.float32))
    return wp, bp


# Batch rows per grid step for large batches.  Chosen for DMA amortization
# (mem-bound kernels reach ~85%+ of HBM roofline at 512+ row tiles), not MXU
# fill.  Footprint at 512: x tile 512*784*4B*2buf ~ 3.1 MiB + w 200 KiB +
# out 128 KiB*2 -- comfortably inside v5e's 16 MiB default scoped VMEM and
# v7x's 32 MiB default / 64 MiB physical.  If raised past ~1024 (or K grows),
# pass vmem_limit_bytes in pltpu.CompilerParams.
TILE_B = 512


@functools.partial(jax.jit, static_argnames=("num_classes", "out_dtype"))
def one_layer_net_forward(x_nchw, wp, bp, *, num_classes, out_dtype=jnp.bfloat16):
    """Per-call path: flatten x, run the fused GEMM+bias kernel, slice logits."""
    B = x_nchw.shape[0]
    x = x_nchw.reshape(B, -1)                     # x.view(B, -1), stays f32
    K = x.shape[1]
    Kw, Np = wp.shape
    assert K == Kw, f"input_dim mismatch: x gives K={K}, weight expects {Kw}"

    # Batch tiling:
    #  * B <= 8: single full-array block (block dims == array dims is allowed
    #    regardless of divisibility).
    #  * mid-size B: split into (up to) two ~equal tiles so the "parallel"
    #    batch axis can shard across v7x's 2 TensorCores (near-free on 1-TC
    #    chips: weight block is revisited, only ~0.35 us extra step overhead).
    #  * large B: TILE_B rows per step; cdiv grid + masked partial last block
    #    keeps batch-padding waste at <8 rows.
    if B <= 8:
        tile_b = B
    elif B <= 2 * TILE_B:
        tile_b = _round_up(pl.cdiv(B, 2), 8)
    else:
        tile_b = TILE_B
    grid_b = pl.cdiv(B, tile_b)

    cost = pl.CostEstimate(
        flops=2 * B * K * Np,
        transcendentals=0,
        bytes_accessed=(B * K * 4) + (K * Np * 2) + (Np * 4)
        + (B * Np * jnp.dtype(out_dtype).itemsize),
    )

    out = pl.pallas_call(
        masked_linear_kernel,
        out_shape=jax.ShapeDtypeStruct((B, Np), out_dtype),
        grid=(grid_b,),
        in_specs=[
            pl.BlockSpec((tile_b, K), lambda i: (i, 0)),   # K unpadded; last dim == full dim
            pl.BlockSpec((K, Np), lambda i: (0, 0)),       # resident, revisited block
            pl.BlockSpec((1, Np), lambda i: (0, 0)),
        ],
        out_specs=pl.BlockSpec((tile_b, Np), lambda i: (i, 0)),
        compiler_params=pltpu.CompilerParams(
            dimension_semantics=("parallel",)),
        cost_estimate=cost,
        # TODO(synk): if input_dim (K) grows large, add a K grid axis marked
        # "arbitrary" with a VMEM f32 accumulator; size the K tile against the
        # chip generation's VMEM (64 MiB physical / 32 MiB default scoped on
        # v7x, 16 MiB default scoped on v5e) and set vmem_limit_bytes explicitly.
    )(x, wp, bp)

    return out[:, :num_classes]


if __name__ == "__main__":
    # Deterministic synthetic parameters (no checkpoint load).
    input_dim = 784          # 1 * 28 * 28, matches default OneLayerNet(input_dim=784)
    num_classes = 10
    sparsity = 0.8           # 'random' sparsity: keep ~20% of weights

    key = jax.random.PRNGKey(0)
    kx, kw, kb, km = jax.random.split(key, 4)

    batch = 2
    x = jax.random.normal(kx, (batch, 1, 28, 28), dtype=jnp.float32)  # NCHW

    # Kaiming-uniform-ish init, deterministic.
    bound = 1.0 / jnp.sqrt(jnp.float32(input_dim))
    weight = jax.random.uniform(kw, (num_classes, input_dim),
                                minval=-bound, maxval=bound, dtype=jnp.float32)
    bias = jax.random.uniform(kb, (num_classes,),
                              minval=-bound, maxval=bound, dtype=jnp.float32)
    # random sparsity mask: 1 with prob (1 - sparsity)
    mask = (jax.random.uniform(km, (num_classes, input_dim)) >= sparsity).astype(jnp.float32)
    # TODO(synk): 'blocked' / 'n:m' sparsityType mask generation not reproduced; only 'random'.

    # One-time prep (mask folded into weight, bf16, N padded to 128). Persist wp/bp.
    wp, bp = prepare_params(weight, mask, bias)
    wp, bp = jax.block_until_ready((wp, bp))

    logits = one_layer_net_forward(x, wp, bp, num_classes=num_classes)
    jax.block_until_ready(logits)

    # Reference check against plain f32 JAX (same math as F.linear(x, W*mask, b)).
    # bf16 MXU operands + bf16 output store -> loosened tolerance.
    ref = x.reshape(batch, -1) @ (weight * mask).T + bias
    assert logits.shape == (batch, num_classes)
    assert logits.dtype == jnp.bfloat16
    assert jnp.allclose(logits.astype(jnp.float32), ref, atol=5e-2, rtol=5e-2)

    print("KERNEL_OK")
</pallas_src>

<mosaic_0001>
module attributes {stable_mosaic.version = 11 : i64} {
  func.func @masked_linear_kernel(%arg0: i32, %arg1: memref<2x784xf32, #tpu.memory_space<vmem>>, %arg2: memref<784x128xbf16, #tpu.memory_space<vmem>>, %arg3: memref<1x128xf32, #tpu.memory_space<vmem>>, %arg4: memref<2x128xbf16, #tpu.memory_space<vmem>>) attributes {dimension_semantics = [#tpu.dimension_semantics<parallel>], iteration_bounds = array<i64: 1>, scalar_prefetch = 0 : i64, scratch_operands = 0 : i64, tpu.core_type = #tpu.core_type<tc>, window_params = [{transform_indices = @transform_0, window_bounds = array<i64: 2, 784>}, {pipeline_mode = #tpu.pipeline_mode<synchronous>, transform_indices = @transform_1, window_bounds = array<i64: 784, 128>}, {pipeline_mode = #tpu.pipeline_mode<synchronous>, transform_indices = @transform_2, window_bounds = array<i64: 1, 128>}, {transform_indices = @transform_3, window_bounds = array<i64: 2, 128>}]} {
    %c0 = arith.constant 0 : index
    %c0_0 = arith.constant 0 : index
    %0 = vector.load %arg1[%c0, %c0_0] : memref<2x784xf32, #tpu.memory_space<vmem>>, vector<2x784xf32>
    %1 = arith.truncf %0 : vector<2x784xf32> to vector<2x784xbf16>
    %c0_1 = arith.constant 0 : index
    %c0_2 = arith.constant 0 : index
    %2 = vector.load %arg2[%c0_1, %c0_2] : memref<784x128xbf16, #tpu.memory_space<vmem>>, vector<784x128xbf16>
    %cst = arith.constant dense<0.000000e+00> : vector<2x128xf32>
    %3 = tpu.matmul %1, %2, %cst {dimension_numbers = #tpu.dot_dimension_numbers<[1], [0], [0], [1], [0, 0, 1, 1], [], []>} : vector<2x784xbf16>, vector<784x128xbf16>, vector<2x128xf32> -> vector<2x128xf32>
    %c0_3 = arith.constant 0 : index
    %c0_4 = arith.constant 0 : index
    %4 = vector.load %arg3[%c0_3, %c0_4] : memref<1x128xf32, #tpu.memory_space<vmem>>, vector<1x128xf32>
    %5 = vector.broadcast %4 : vector<1x128xf32> to vector<2x128xf32>
    %6 = arith.addf %3, %5 : vector<2x128xf32>
    %7 = arith.truncf %6 : vector<2x128xf32> to vector<2x128xbf16>
    %c0_5 = arith.constant 0 : index
    %c0_6 = arith.constant 0 : index
    %8 = vector.load %arg4[%c0_5, %c0_6] : memref<2x128xbf16, #tpu.memory_space<vmem>>, vector<2x128xbf16>
    tpu.vector_store %arg4[%c0_5, %c0_6], %7 {strides = array<i32>} : memref<2x128xbf16, #tpu.memory_space<vmem>>, vector<2x128xbf16>,
    return
  }
  func.func @transform_0(%arg0: i32) -> (i32, i32) {
    %c0_i32 = arith.constant 0 : i32
    %c0_i32_0 = arith.constant 0 : i32
    return %arg0, %c0_i32 : i32, i32
  }
  func.func @transform_1(%arg0: i32) -> (i32, i32) {
    %c0_i32 = arith.constant 0 : i32
    %c0_i32_0 = arith.constant 0 : i32
    %c0_i32_1 = arith.constant 0 : i32
    return %c0_i32, %c0_i32_0 : i32, i32
  }
  func.func @transform_2(%arg0: i32) -> (i32, i32) {
    %c0_i32 = arith.constant 0 : i32
    %c0_i32_0 = arith.constant 0 : i32
    %c0_i32_1 = arith.constant 0 : i32
    return %c0_i32, %c0_i32_0 : i32, i32
  }
  func.func @transform_3(%arg0: i32) -> (i32, i32) {
    %c0_i32 = arith.constant 0 : i32
    %c0_i32_0 = arith.constant 0 : i32
    return %arg0, %c0_i32 : i32, i32
  }
}

</mosaic_0001>

<bundles_post_ra>
// kernel: one_layer_net_forward.1
= control target key start
LH: loop header
LB: loop body
LE: loop exit
PB: predicated region body
PF: predicated region fallthrough
CT: control target
= control target key end

     0   :  { %8 = vsyncpa [#allocation3], 0  ;;  %s952_s0 = inlined_call_operand.vmem [shape: f32[2,784], index: 0, kind: input, shape index: {}]   ;;  %s953_s1 = inlined_call_operand.hbm [shape: bf16[784,128], index: 1, kind: input, shape index: {}]   ;;  %s954_s2 = inlined_call_operand.vmem [shape: f32[1,128], index: 2, kind: input, shape index: {}]   ;;  %s955_s3 = inlined_call_operand.hbm [shape: bf16[2,128], index: 3, kind: output, shape index: {}]  }
   0x1   :  { %9 = vsyncpa [#allocation4], 0  ;;  %s892_s12 = smov [#allocation2]   ;;  %s844_s16 = scalar_lea.hbm %s953_s1, 6272 }
   0x2   :  { %s17_s13 = sshll.u32 %s892_s12, 4  ;;  %p845_p0 = scmp.ne.s32.totalorder %s953_s1, %s844_s16  ;;  %s18_s13 = int_to_ptr.vmem [resolvable:$true] %s17_s13 }
   0x3   :  { %p848_p1 = scmp.lt.u32.totalorder %s844_s16, %s953_s1 }
   0x5   :  { %p850_p2 = pnand %p848_p1, %p845_p0 }
   0x7   :  { %853 = shalt.err (!%p850_p2)
}
   0x8   :  { %s854_s21 = scalar_lea.vmem %s18_s13, 6272  ;;  %p859_p4 = scmp.lt.s32.totalorder %s18_s13, %s18_s13 }
   0x9   :  { %p855_p3 = scmp.ne.s32.totalorder %s18_s13, %s854_s21  ;;  %p860_p5 = scmp.lt.s32.totalorder %s854_s21, %s854_s21 }
   0xb   :  { %p861_p6 = por %p860_p5, %p859_p4 }
   0xd   :  { %p862_p7 = pnand %p861_p6, %p855_p3 }
   0xf   :  { %865 = shalt.err (!%p862_p7)
}
  0x10   :  { %s893_s22 = smov 64   ;;  %s894_s23 = smov 4  }
  0x11   :  { %23 = dma.hbm_to_vmem [thread:$0]  %s953_s1, 6272, %s18_s13, [#allocation3], %s893_s22, %s893_s22, %s894_s23  }
  0x12   :  { %888 = dma.done.wait [#allocation3], 6272  }
  0x13   :  { %889 = vsyncadd [#allocation3], 4294961024  ;;  %v793_v0 = vld [vmem:[#allocation2 + $0x40] sm:$0xff]   ;;  %v797_v4 = vld [vmem:[#allocation2 + $0x48] sm:$0xff]   ;;  %v895_v21 = vmov 1983009808   ;;  %v38_v23 = vlaneseq }
  0x14   :  { %v794_v1 = vld [vmem:[#allocation2] sm:$0xff]   ;;  %712 = vmatprep.subr.bf16.mxu0 %v793_v0  ;;  %v798_v5 = vld [vmem:[#allocation2 + $0x8] sm:$0xff]   ;;  %v801_v8 = vld [vmem:[#allocation2 + $0x50] sm:$0xff]   ;;  %v36_v22 = vunpack.c.l.s4 %v895_v21  ;;  %v896_v45 = vmov 0.0   ;;  %vm897_vm0 = vmmov 0   ;;  %vm480_vm1 = vcmask 130048  }
  0x15   :  { %v795_v2 = vld [vmem:[#allocation2 + $0xc0] sm:$0xff]   ;;  %713 = vmatpush3.bf16.msra.mxu0 %v794_v1  ;;  %v799_v6 = vld [vmem:[#allocation2 + $0xc8] sm:$0xff]   ;;  %v802_v9 = vld [vmem:[#allocation2 + $0x10] sm:$0xff]   ;;  %v39_v29 = vshrl.u32 %v38_v23, 7 }
  0x16   :  { %v796_v3 = vld [vmem:[#allocation2 + $0x80] sm:$0xff]   ;;  %734 = vmatprep.subr.bf16.mxu1 %v795_v2  ;;  %714 = vmatprep.subr.bf16.mxu0 %v797_v4  ;;  %v800_v7 = vld [vmem:[#allocation2 + $0x88] sm:$0xff]   ;;  %v803_v10 = vld [vmem:[#allocation2 + $0xd0] sm:$0xff]   ;;  %v37_v28 = vunpack.c.0.s8 %v36_v22 }
  0x17   :  { %735 = vmatpush3.bf16.msra.mxu1 %v796_v3  ;;  %v804_v11 = vld [vmem:[#allocation2 + $0x90] sm:$0xff]   ;;  %v805_v12 = vld [vmem:[#allocation2 + $0x58] sm:$0xff]   ;;  %v809_v16 = vld [vmem:[#allocation2 + $0x60] sm:$0xff]  }
  0x18   :  { %736 = vmatprep.subr.bf16.mxu1 %v799_v6  ;;  %v806_v13 = vld [vmem:[#allocation2 + $0x18] sm:$0xff]   ;;  %v810_v17 = vld [vmem:[#allocation2 + $0x20] sm:$0xff]   ;;  %v813_v20 = vld [vmem:[#allocation2 + $0x68] sm:$0xff]   ;;  %v40_v34 = vsub.s32 %v37_v28, %v39_v29 }
  0x19   :  { %715 = vmatpush3.bf16.msra.mxu0 %v798_v5  ;;  %v807_v14 = vld [vmem:[#allocation2 + $0xd8] sm:$0xff]   ;;  %v811_v18 = vld [vmem:[#allocation2 + $0xe0] sm:$0xff]   ;;  %v814_v24 = vld [vmem:[#allocation2 + $0x28] sm:$0xff]  }
  0x1a   :  { %716 = vmatprep.subr.bf16.mxu0 %v801_v8  ;;  %v808_v15 = vld [vmem:[#allocation2 + $0x98] sm:$0xff]   ;;  %v812_v19 = vld [vmem:[#allocation2 + $0xa0] sm:$0xff]   ;;  %v815_v25 = vld [vmem:[#allocation2 + $0xe8] sm:$0xff]  }
  0x1b   :  { %737 = vmatpush3.bf16.msra.mxu1 %v800_v7  ;;  %v816_v26 = vld [vmem:[#allocation2 + $0xa8] sm:$0xff]   ;;  %v817_v27 = vld [vmem:[#allocation2 + $0x70] sm:$0xff]   ;;  %v821_v33 = vld [vmem:[#allocation2 + $0x78] sm:$0xff]  }
  0x1c   :  { %738 = vmatprep.subr.bf16.mxu1 %v803_v10  ;;  %v818_v30 = vld [vmem:[#allocation2 + $0x30] sm:$0xff]   ;;  %v822_v35 = vld [vmem:[#allocation2 + $0x38] sm:$0xff]   ;;  %v30_v37 = vld [vmem:[%s952_s0] sm:$0xff] }
  0x1d   :  { %717 = vmatpush3.bf16.msra.mxu0 %v802_v9  ;;  %v819_v31 = vld [vmem:[#allocation2 + $0xf0] sm:$0xff]   ;;  %v823_v36 = vld [vmem:[#allocation2 + $0xf8] sm:$0xff]   ;;  %v41_v38 = vrot.slane %v30_v37, %v40_v34  ;;  %v34_v40 = vcombine.high %v30_v37, %v30_v37  ;;  %v825_v41 = vld [vmem:[#allocation2 + $0x140] sm:$0xff]  }
  0x1e   :  { %718 = vmatprep.subr.bf16.mxu0 %v805_v12  ;;  %v820_v32 = vld [vmem:[#allocation2 + $0xb0] sm:$0xff]   ;;  %v824_v39 = vld [vmem:[#allocation2 + $0xb8] sm:$0xff]   ;;  %v827_v48 = vld [vmem:[#allocation2 + $0x100] sm:$0xff]  }
  0x1f   :  { %739 = vmatpush3.bf16.msra.mxu1 %v804_v11  ;;  %v49_v42 = vcombine.high %v41_v38, %v41_v38  ;;  %v48_v43 = vrot.slane %v34_v40, %v40_v34  ;;  %v74_v44 = vpack.c.bf16 %v41_v38, %v41_v38  ;;  %v828_v50 = vld [vmem:[#allocation2 + $0x148] sm:$0xff]   ;;  %v830_v53 = vld [vmem:[#allocation2 + $0x150] sm:$0xff]   ;;  %v832_v55 = vld [vmem:[#allocation2 + $0x158] sm:$0xff]  }
  0x20   :  { %740 = vmatprep.subr.bf16.mxu1 %v807_v14  ;;  %v829_v52 = vld [vmem:[#allocation2 + $0x108] sm:$0xff]   ;;  %v831_v54 = vld [vmem:[#allocation2 + $0x110] sm:$0xff]   ;;  %v833_v56 = vld [vmem:[#allocation2 + $0x118] sm:$0xff]  }
  0x21   :  { %719 = vmatpush3.bf16.msra.mxu0 %v806_v13  ;;  %v75_v46 = vpack.c.bf16 %v49_v42, %v49_v42  ;;  %v50_v47 = vcombine.high %v48_v43, %v48_v43  ;;  %v76_v49 = vpack.c.bf16 %v48_v43, %v48_v43  ;;  %v834_v57 = vld [vmem:[#allocation2 + $0x160] sm:$0xff]   ;;  %v31_v59 = vld [vmem:[%s952_s0 + $0x8] sm:$0x3f]  ;;  %v838_v5 = vld [vmem:[#allocation2 + $0x170] sm:$0xff]  }
  0x22   :  { %720 = vmatprep.subr.bf16.mxu0 %v809_v16  ;;  %v842_v58 = vld [vmem:[#allocation2 + $0x180] sm:$0xff]   ;;  %v51_v60 = vcombine.high %v31_v59, %v31_v59  ;;  %v58_v61 = vrot.slane %v31_v59, %v40_v34  ;;  %v836_v1 = vld [vmem:[#allocation2 + $0x168] sm:$0xff]   ;;  %v839_v6 = vld [vmem:[#allocation2 + $0x130] sm:$0xff]  }
  0x23   :  { %741 = vmatpush3.bf16.msra.mxu1 %v808_v15  ;;  %516 = vmatprep.mubr.bf16.mxu0 %v75_v46  ;;  %v77_v51 = vpack.c.bf16 %v50_v47, %v50_v47  ;;  %v835_v62 = vld [vmem:[#allocation2 + $0x120] sm:$0xff]   ;;  %v837_v4 = vld [vmem:[#allocation2 + $0x128] sm:$0xff]   ;;  %v840_v7 = vld [vmem:[#allocation2 + $0x178] sm:$0xff]  }
  0x24   :  { %742 = vmatprep.subr.bf16.mxu1 %v811_v18  ;;  %v65_v63 = vrot.slane %v51_v60, %v40_v34  ;;  %v66_v0 = vcombine.high %v58_v61, %v58_v61  ;;  %v841_v8 = vld [vmem:[#allocation2 + $0x138] sm:$0xff]   ;;  %v78_v9 = vpack.c.bf16 %v58_v61, %v58_v61  ;;  %v661_v11 = vld [vmem:[%s954_s2] ss:$0 sm:$0xff]  ;;  %s898_s2 = smov [#allocation5]  }
  0x25   :  { %721 = vmatpush3.bf16.msra.mxu0 %v810_v17  ;;  %556 = vmatprep.mubr.bf16.mxu1 %v77_v51  ;;  %s652_s30 = sshll.u32 %s898_s2, 4  ;;  %s653_s30 = int_to_ptr.vmem [resolvable:$true] %s652_s30 }
  0x26   :  { %722 = vmatprep.subr.bf16.mxu0 %v813_v20  ;;  %v79_v2 = vpack.c.bf16 %v66_v0, %v66_v0  ;;  %v80_v3 = vpack.c.bf16 %v65_v63, %v65_v63  ;;  %s866_s4 = scalar_lea.vmem %s653_s30, 16  ;;  %s870_s5 = scalar_lea.vmem %s653_s30, 32 }
  0x27   :  { %743 = vmatpush3.bf16.msra.mxu1 %v812_v19  ;;  %p867_p8 = scmp.ne.s32.totalorder %s653_s30, %s866_s4  ;;  %p871_p9 = scmp.lt.s32.totalorder %s653_s30, %s653_s30 }
  0x28   :  { %744 = vmatprep.subr.bf16.mxu1 %v815_v25  ;;  %p872_p10 = scmp.lt.s32.totalorder %s870_s5, %s866_s4 }
  0x29   :  { %723 = vmatpush3.bf16.msra.mxu0 %v814_v24 }
  0x2a   :  { %724 = vmatprep.subr.bf16.mxu0 %v817_v27  ;;  %p873_p11 = por %p872_p10, %p871_p9 }
  0x2b   :  { %745 = vmatpush3.bf16.msra.mxu1 %v816_v26 }
  0x2c   :  { %746 = vmatprep.subr.bf16.mxu1 %v819_v31  ;;  %p874_p12 = pnand %p873_p11, %p867_p8 }
  0x2d   :  { %725 = vmatpush3.bf16.msra.mxu0 %v818_v30 }
  0x2e   :  { %726 = vmatprep.subr.bf16.mxu0 %v821_v33 }
  0x2f   :  { %747 = vmatpush3.bf16.msra.mxu1 %v820_v32 }
  0x30   :  { %748 = vmatprep.subr.bf16.mxu1 %v823_v36 }
  0x31   :  { %727 = vmatpush3.bf16.msra.mxu0 %v822_v35 }
  0x32   :  { %756 = vmatprep.subr.bf16.mxu0 %v825_v41 }
  0x33   :  { %749 = vmatpush3.bf16.msra.mxu1 %v824_v39 }
  0x34   :  { %780 = vmatprep.subr.bf16.mxu1 %v896_v45  ;;  %517 = vmatmul.mubr.bf16.vlgmr.msra.gmra.mrb[0].mxu0 %v74_v44 }
  0x35   :  { %757 = vmatpush3.bf16.msra.mxu0 %v827_v48  ;;  %596 = vmatprep.mubr.bf16.mxu0 %v79_v2 }
  0x36   :  { %557 = vmatmul.mubr.bf16.vlgmr.msra.gmra.mrb[0].mxu1 %v76_v49  ;;  %758 = vmatprep.subr.bf16.mxu0 %v828_v50 }
  0x37   :  { %782 = vmatprep.mubr.msk.bf16.mxu1 %vm897_vm0, %v896_v45  ;;  %781 = vmatpush3.bf16.msra.mxu1 %v842_v58 }
  0x39   :  { %759 = vmatpush3.bf16.msra.mxu0 %v829_v52 }
  0x3a   :  { %760 = vmatprep.subr.bf16.mxu0 %v830_v53 }
  0x3d   :  { %761 = vmatpush3.bf16.msra.mxu0 %v831_v54 }
  0x3e   :  { %762 = vmatprep.subr.bf16.mxu0 %v832_v55  ;;  %783 = vmatmul.mubr.msk.bf16.vlgmr.msra.gmra.mrb[4].mxu1 %vm480_vm1, %v80_v3 }
  0x41   :  { %763 = vmatpush3.bf16.msra.mxu0 %v833_v56 }
  0x42   :  { %764 = vmatprep.subr.bf16.mxu0 %v834_v57 }
  0x45   :  { %765 = vmatpush3.bf16.msra.mxu0 %v835_v62 }
  0x46   :  { %766 = vmatprep.subr.bf16.mxu0 %v836_v1 }
  0x49   :  { %767 = vmatpush3.bf16.msra.mxu0 %v837_v4 }
  0x4a   :  { %768 = vmatprep.subr.bf16.mxu0 %v838_v5 }
  0x4d   :  { %769 = vmatpush3.bf16.msra.mxu0 %v839_v6 }
  0x4e   :  { %770 = vmatprep.subr.bf16.mxu0 %v840_v7 }
  0x51   :  { %771 = vmatpush3.bf16.msra.mxu0 %v841_v8 }
  0x54   :  { %597 = vmatmul.mubr.bf16.vlgmr.msra.gmra.mrb[4].mxu0 %v78_v9 }
 0x107   :  { %v728_v10 = vpop.f32.mrb[0].mxu0 }
 0x108   :  { %v729_v12 = vpop.f32.mrb[1].mxu0 }
 0x109   :  { %v730_v13 = vadd.f32 %v729_v12, %v728_v10  ;;  %v731_v14 = vpop.f32.mrb[2].mxu0  ;;  %v750_v15 = vpop.f32.mrb[0].mxu1 }
 0x10a   :  { %v732_v16 = vpop.f32.mrb[3].mxu0  ;;  %v751_v17 = vpop.f32.mrb[1].mxu1 }
 0x10b   :  { %v519_v18 = vadd.f32 %v730_v13, %v661_v11  ;;  %v752_v19 = vadd.f32 %v751_v17, %v750_v15  ;;  %v753_v20 = vpop.f32.mrb[2].mxu1 }
 0x10c   :  { %v754_v21 = vpop.f32.mrb[3].mxu1 }
 0x10d   :  { %v559_v22 = vadd.f32 %v752_v19, %v519_v18 }
 0x111   :  { %v638_v23 = vpop.f32.mrb[4].mxu1 }
 0x112   :  { %v784_v24 = vpop.f32.mrb[5].mxu1 }
 0x113   :  { %v641_v25 = vpop.f32.mrb[6].mxu1 }
 0x114   :  { %v785_v26 = vpop.f32.mrb[7].mxu1 }
 0x127   :  { %v772_v27 = vpop.f32.mrb[4].mxu0 }
 0x128   :  { %v773_v28 = vpop.f32.mrb[5].mxu0 }
 0x129   :  { %v774_v29 = vadd.f32 %v773_v28, %v772_v27  ;;  %v775_v30 = vpop.f32.mrb[6].mxu0 }
 0x12a   :  { %v776_v31 = vpop.f32.mrb[7].mxu0 }
 0x12b   :  { %v599_v32 = vadd.f32 %v774_v29, %v559_v22 }
 0x12d   :  { %v639_v33 = vadd.f32 %v638_v23, %v599_v32 }
 0x12f   :  { %v644_v34 = vpack.c.bf16 %v639_v33, %v639_v33 }
 0x131   :  { %645 = vst [vmem:[#allocation5] sm:$0x1] %v644_v34 }
 0x132   :  { %877 = shalt.err (!%p874_p12)
}
 0x133   :  { %s878_s8 = scalar_lea.hbm %s955_s3, 16 }
 0x134   :  { %p879_p13 = scmp.ne.s32.totalorder %s955_s3, %s878_s8  ;;  %p882_p0 = scmp.lt.u32.totalorder %s878_s8, %s955_s3 }
 0x136   :  { %p884_p1 = pnand %p882_p0, %p879_p13 }
 0x138   :  { %887 = shalt.err (!%p884_p1)
}
 0x139   :  { %655 = dma.vmem_to_hbm [thread:$0]  %s653_s30, 16, %s955_s3, [#allocation4]  }
 0x13a   :  { %890 = dma.done.wait [#allocation4], 16  }
 0x13b   :  { %891 = vsyncadd [#allocation4], 4294967280 }
 0x13c   :  { %659 = vsyncpa [#allocation3], 1 }
 0x13d   :  { %660 = vsyncpa [#allocation4], 1 }

</bundles_post_ra>
